<compile_context>
chip_gen: v6e
topology: v6e:2x2x1
jax: 0.10.0
libtpu: 0.0.40
codegen_flags: <defaults>
</compile_context>

<pallas_src>
import functools

import jax
import jax.numpy as jnp
from jax.experimental import pallas as pl
from jax.experimental.pallas import tpu as pltpu


def _hinge_kernel(pred_ref, label_ref, out_ref, *,
                  rows, tile_rows, lane, steps_per_core, needs_mask):
    i = pl.program_id(1)

    @pl.when(i == 0)
    def _():
        out_ref[...] = jnp.zeros_like(out_ref)

    p = pred_ref[...].astype(jnp.float32)
    t = label_ref[...].astype(jnp.float32)
    hinge = jnp.maximum(jnp.float32(1.0) - p * t, jnp.float32(0.0))

    def fold_add(x):
        # VPU-only partial reduction: fold (tile_rows, lane) into the resident
        # (1, 8, lane) output accumulator with elementwise adds (no XLU work
        # inside the kernel; the tiny final reduce happens in the wrapper).
        out_ref[...] += jnp.sum(x.reshape(1, tile_rows // 8, 8, lane), axis=1)

    if needs_mask:
        c = pl.program_id(0)
        row_start = (c * steps_per_core + i) * tile_rows  # rows <= n/128, no overflow

        @pl.when(row_start + tile_rows <= rows)
        def _():
            fold_add(hinge)  # interior block: unmasked fast path

        @pl.when(row_start + tile_rows > rows)
        def _():
            # Partial (or fully out-of-range, clamped-in-index-map) block:
            # zero out rows past the valid range with a block-local index.
            rem = rows - row_start  # may be <= 0 -> everything masked
            row_ids = jax.lax.broadcasted_iota(jnp.int32, (tile_rows, lane), 0)
            fold_add(jnp.where(row_ids < rem, hinge, jnp.float32(0.0)))
    else:
        fold_add(hinge)


def hinge_loss(pred, label, *, tile_rows=4096, lane=128, num_cores=2):
    """mean(relu(1 - pred * label)) computed with a Pallas TPU kernel."""
    assert pred.shape == label.shape, (pred.shape, label.shape)
    n = pred.size
    assert n > 0

    pred_flat = pred.reshape(-1)
    label_flat = label.reshape(-1)

    min_block = 8 * lane
    n_aligned = (n // min_block) * min_block

    if n_aligned == 0:
        # Tiny input (< 1024 elements): not worth a kernel launch.
        p = pred_flat.astype(jnp.float32)
        t = label_flat.astype(jnp.float32)
        return jnp.mean(jnp.maximum(jnp.float32(1.0) - p * t, jnp.float32(0.0)))

    # Ragged tail handled with plain jnp (avoids a full-array jnp.pad copy).
    if n_aligned != n:
        tp = pred_flat[n_aligned:].astype(jnp.float32)
        tt = label_flat[n_aligned:].astype(jnp.float32)
        tail_sum = jnp.sum(jnp.maximum(jnp.float32(1.0) - tp * tt, jnp.float32(0.0)))
        pred_flat = pred_flat[:n_aligned]
        label_flat = label_flat[:n_aligned]
    else:
        tail_sum = jnp.float32(0.0)

    rows = n_aligned // lane                                  # multiple of 8
    tile_rows = max(8, (min(tile_rows, rows) // 8) * 8)       # multiple of 8
    total_blocks = pl.cdiv(rows, tile_rows)
    num_cores = max(1, min(num_cores, total_blocks))
    steps_per_core = pl.cdiv(total_blocks, num_cores)
    covered_blocks = num_cores * steps_per_core
    needs_mask = covered_blocks * tile_rows != rows

    pred2d = pred_flat.reshape(rows, lane)
    label2d = label_flat.reshape(rows, lane)

    if covered_blocks > total_blocks:
        # Some grid steps would map past the last row-block; clamp them onto
        # the last block (their contribution is fully masked in the kernel).
        last = total_blocks - 1

        def row_block_map(c, i):
            return (jnp.minimum(c * steps_per_core + i, last), 0)
    else:
        def row_block_map(c, i):
            return (c * steps_per_core + i, 0)

    kernel = functools.partial(
        _hinge_kernel,
        rows=rows, tile_rows=tile_rows, lane=lane,
        steps_per_core=steps_per_core, needs_mask=needs_mask,
    )

    in_bytes = n_aligned * (pred2d.dtype.itemsize + label2d.dtype.itemsize)
    cost = pl.CostEstimate(
        flops=3 * n_aligned,
        transcendentals=0,
        bytes_accessed=in_bytes + num_cores * 8 * lane * 4,
    )

    partials = pl.pallas_call(
        kernel,
        out_shape=jax.ShapeDtypeStruct((num_cores, 8, lane), jnp.float32),
        grid_spec=pltpu.PrefetchScalarGridSpec(
            num_scalar_prefetch=0,
            grid=(num_cores, steps_per_core),
            in_specs=[
                pl.BlockSpec((tile_rows, lane), row_block_map),
                pl.BlockSpec((tile_rows, lane), row_block_map),
            ],
            out_specs=pl.BlockSpec((1, 8, lane), lambda c, i: (c, 0, 0)),
        ),
        compiler_params=pltpu.CompilerParams(
            dimension_semantics=("parallel", "arbitrary"),
        ),
        cost_estimate=cost,
    )(pred2d, label2d)

    return (jnp.sum(partials) + tail_sum) * jnp.float32(1.0 / n)


def _ref_hinge(pred, label):
    p = pred.astype(jnp.float32)
    t = label.astype(jnp.float32)
    return jnp.mean(jnp.maximum(1.0 - p * t, 0.0))


if __name__ == "__main__":
    key = jax.random.PRNGKey(0)
    k_pred, k_label, k_pred2, k_label2 = jax.random.split(key, 4)

    # Primary case: small GAN-discriminator-like shape, evenly divisible.
    B, C, H, W = 2, 4, 16, 16
    pred = jax.random.normal(k_pred, (B, C, H, W), dtype=jnp.float32)
    label = jnp.where(
        jax.random.bernoulli(k_label, 0.5, (B, C, H, W)), 1.0, -1.0
    ).astype(jnp.float32)

    loss = hinge_loss(pred, label)
    jax.block_until_ready(loss)
    ref = _ref_hinge(pred, label)
    assert jnp.allclose(loss, ref, atol=1e-5, rtol=1e-5), (loss, ref)

    # Secondary case: ragged size with small tiles to exercise the two-core
    # split, the clamped/fully-masked block, the partial-block mask and the
    # jnp tail path.
    n2 = 3 * 1024 + 17
    pred2 = jax.random.normal(k_pred2, (n2,), dtype=jnp.float32)
    label2 = jnp.where(
        jax.random.bernoulli(k_label2, 0.5, (n2,)), 1.0, -1.0
    ).astype(jnp.float32)

    loss2 = hinge_loss(pred2, label2, tile_rows=8)
    jax.block_until_ready(loss2)
    ref2 = _ref_hinge(pred2, label2)
    assert jnp.allclose(loss2, ref2, atol=1e-5, rtol=1e-5), (loss2, ref2)

    print("KERNEL_OK")
</pallas_src>

<mosaic_0001>
module attributes {stable_mosaic.version = 11 : i64} {
  func.func @_hinge_kernel(%arg0: i32, %arg1: i32, %arg2: memref<16x128xf32, #tpu.memory_space<vmem>>, %arg3: memref<16x128xf32, #tpu.memory_space<vmem>>, %arg4: memref<1x8x128xf32, #tpu.memory_space<vmem>>) attributes {dimension_semantics = [#tpu.dimension_semantics<parallel>, #tpu.dimension_semantics<arbitrary>], iteration_bounds = array<i64: 1, 1>, scalar_prefetch = 0 : i64, scratch_operands = 0 : i64, tpu.core_type = #tpu.core_type<tc>, window_params = [{transform_indices = @transform_0, window_bounds = array<i64: 16, 128>}, {transform_indices = @transform_1, window_bounds = array<i64: 16, 128>}, {transform_indices = @transform_2, window_bounds = array<i64: 1, 8, 128>}]} {
    %c0_i32 = arith.constant 0 : i32
    %0 = arith.cmpi eq, %arg1, %c0_i32 : i32
    %1 = arith.extui %0 : i1 to i32
    %c0_i32_0 = arith.constant 0 : i32
    %2 = arith.cmpi ne, %1, %c0_i32_0 : i32
    scf.if %2 {
      %cst_12 = arith.constant 0.000000e+00 : f32
      %15 = vector.broadcast %cst_12 : f32 to vector<1x8x128xf32>
      %c0_13 = arith.constant 0 : index
      %c0_14 = arith.constant 0 : index
      %c0_15 = arith.constant 0 : index
      %16 = vector.load %arg4[%c0_13, %c0_14, %c0_15] : memref<1x8x128xf32, #tpu.memory_space<vmem>>, vector<1x8x128xf32>
      tpu.vector_store %arg4[%c0_13, %c0_14, %c0_15], %15 {strides = array<i32>} : memref<1x8x128xf32, #tpu.memory_space<vmem>>, vector<1x8x128xf32>,
    } else {
    }
    %c0 = arith.constant 0 : index
    %c0_1 = arith.constant 0 : index
    %3 = vector.load %arg2[%c0, %c0_1] : memref<16x128xf32, #tpu.memory_space<vmem>>, vector<16x128xf32>
    %c0_2 = arith.constant 0 : index
    %c0_3 = arith.constant 0 : index
    %4 = vector.load %arg3[%c0_2, %c0_3] : memref<16x128xf32, #tpu.memory_space<vmem>>, vector<16x128xf32>
    %5 = arith.mulf %3, %4 : vector<16x128xf32>
    %cst = arith.constant 1.000000e+00 : f32
    %6 = vector.broadcast %cst : f32 to vector<16x128xf32>
    %7 = arith.subf %6, %5 : vector<16x128xf32>
    %cst_4 = arith.constant 0.000000e+00 : f32
    %8 = vector.broadcast %cst_4 : f32 to vector<16x128xf32>
    %9 = arith.maximumf %7, %8 : vector<16x128xf32>
    %c0_5 = arith.constant 0 : index
    %c0_6 = arith.constant 0 : index
    %c0_7 = arith.constant 0 : index
    %10 = vector.load %arg4[%c0_5, %c0_6, %c0_7] : memref<1x8x128xf32, #tpu.memory_space<vmem>>, vector<1x8x128xf32>
    %11 = vector.shape_cast %9 : vector<16x128xf32> to vector<1x2x8x128xf32>
    %cst_8 = arith.constant dense<0.000000e+00> : vector<1x8x128xf32>
    %12 = vector.multi_reduction <add>, %11, %cst_8 [1] : vector<1x2x8x128xf32> to vector<1x8x128xf32>
    %13 = arith.addf %10, %12 : vector<1x8x128xf32>
    %c0_9 = arith.constant 0 : index
    %c0_10 = arith.constant 0 : index
    %c0_11 = arith.constant 0 : index
    %14 = vector.load %arg4[%c0_9, %c0_10, %c0_11] : memref<1x8x128xf32, #tpu.memory_space<vmem>>, vector<1x8x128xf32>
    tpu.vector_store %arg4[%c0_9, %c0_10, %c0_11], %13 {strides = array<i32>} : memref<1x8x128xf32, #tpu.memory_space<vmem>>, vector<1x8x128xf32>,
    return
  }
  func.func @transform_0(%arg0: i32, %arg1: i32) -> (i32, i32) {
    %c1_i32 = arith.constant 1 : i32
    %0 = arith.muli %arg0, %c1_i32 : i32
    %1 = arith.addi %0, %arg1 : i32
    %c0_i32 = arith.constant 0 : i32
    %c0_i32_0 = arith.constant 0 : i32
    return %1, %c0_i32 : i32, i32
  }
  func.func @transform_1(%arg0: i32, %arg1: i32) -> (i32, i32) {
    %c1_i32 = arith.constant 1 : i32
    %0 = arith.muli %arg0, %c1_i32 : i32
    %1 = arith.addi %0, %arg1 : i32
    %c0_i32 = arith.constant 0 : i32
    %c0_i32_0 = arith.constant 0 : i32
    return %1, %c0_i32 : i32, i32
  }
  func.func @transform_2(%arg0: i32, %arg1: i32) -> (i32, i32, i32) {
    %c0_i32 = arith.constant 0 : i32
    %c0_i32_0 = arith.constant 0 : i32
    %c0_i32_1 = arith.constant 0 : i32
    return %arg0, %c0_i32, %c0_i32_0 : i32, i32, i32
  }
}

</mosaic_0001>

<bundles_post_ra>
// kernel: tpu_custom_call.1
= control target key start
LH: loop header
LB: loop body
LE: loop exit
PB: predicated region body
PF: predicated region fallthrough
CT: control target
= control target key end

     0   :  { %7 = vsyncpa [#allocation3], 0  ;;  %s188_s0 = inlined_call_operand.hbm [shape: f32[16,128], index: 0, kind: input, shape index: {}]   ;;  %s189_s1 = inlined_call_operand.hbm [shape: f32[16,128], index: 1, kind: input, shape index: {}]   ;;  %s190_s2 = inlined_call_operand.hbm [shape: f32[1,8,128], index: 2, kind: output, shape index: {}]  }
   0x1   :  { %8 = vsyncpa [#allocation6], 0 }
   0x2   :  { %9 = vsyncpa [#allocation4], 0  ;;  %s159_s9 = smov [#allocation2]  }
   0x3   :  { %s19_s10 = sshll.u32 %s159_s9, 4  ;;  %s20_s10 = int_to_ptr.vmem [resolvable:$true] %s19_s10 }
   0x4   :  { %s101_s11 = scalar_lea.vmem %s20_s10, 256  ;;  %p106_p1 = scmp.lt.s32.totalorder %s20_s10, %s20_s10 }
   0x5   :  { %p102_p0 = scmp.ne.s32.totalorder %s20_s10, %s101_s11  ;;  %p107_p2 = scmp.lt.s32.totalorder %s101_s11, %s101_s11 }
   0x7   :  { %p108_p3 = por %p107_p2, %p106_p1 }
   0x9   :  { %p109_p4 = pnand %p108_p3, %p102_p0 }
   0xb   :  { %112 = shalt.err (!%p109_p4)
}
   0xc   :  { %s160_s12 = smov 128   ;;  %s161_s13 = smov 8  }
   0xd   :  { %25 = dma.hbm_to_vmem [thread:$0]  %s188_s0, 256, %s20_s10, [#allocation3], %s160_s12, %s160_s12, %s161_s13  }
   0xe   :  { %s162_s16 = smov [#allocation5]  }
   0xf   :  { %s35_s17 = sshll.u32 %s162_s16, 4  ;;  %s36_s17 = int_to_ptr.vmem [resolvable:$true] %s35_s17 }
  0x10   :  { %s121_s18 = scalar_lea.vmem %s36_s17, 256  ;;  %p126_p6 = scmp.lt.s32.totalorder %s36_s17, %s36_s17 }
  0x11   :  { %p122_p5 = scmp.ne.s32.totalorder %s36_s17, %s121_s18  ;;  %p127_p7 = scmp.lt.s32.totalorder %s121_s18, %s121_s18 }
  0x13   :  { %p128_p8 = por %p127_p7, %p126_p6 }
  0x15   :  { %p129_p9 = pnand %p128_p8, %p122_p5 }
  0x17   :  { %132 = shalt.err (!%p129_p9)
}
  0x18   :  { %41 = dma.hbm_to_vmem [thread:$0]  %s189_s1, 256, %s36_s17, [#allocation6], %s160_s12, %s160_s12, %s161_s13  }
  0x19   :  { %153 = dma.done.wait [#allocation3], 256  }
  0x1a   :  { %154 = vsyncadd [#allocation3], 4294967040 }
  0x1b   :  { %155 = dma.done.wait [#allocation6], 256  }
  0x1c   :  { %156 = vsyncadd [#allocation6], 4294967040  ;;  %v57_v0 = vld [vmem:[#allocation2] sm:$0xff]  ;;  %v58_v1 = vld [vmem:[#allocation2 + $0x8] sm:$0xff]  ;;  %s163_s0 = smov [#allocation7]  }
  0x1d   :  { %v59_v2 = vld [vmem:[#allocation5] sm:$0xff]  ;;  %v60_v3 = vld [vmem:[#allocation5 + $0x8] sm:$0xff]  ;;  %s77_s21 = sshll.u32 %s163_s0, 4  ;;  %s78_s21 = int_to_ptr.vmem [resolvable:$true] %s77_s21 }
  0x1e   :  { %v61_v4 = vmul.f32 %v59_v2, %v57_v0  ;;  %v62_v5 = vmul.f32 %v60_v3, %v58_v1  ;;  %s133_s1 = scalar_lea.vmem %s78_s21, 128  ;;  %p138_p11 = scmp.lt.s32.totalorder %s78_s21, %s78_s21 }
  0x1f   :  { %p134_p10 = scmp.ne.s32.totalorder %s78_s21, %s133_s1  ;;  %p139_p12 = scmp.lt.s32.totalorder %s133_s1, %s133_s1 }
  0x20   :  { %v63_v6 = vsub.f32 1.0, %v61_v4  ;;  %v64_v7 = vsub.f32 1.0, %v62_v5 }
  0x21   :  { %p140_p13 = por %p139_p12, %p138_p11 }
  0x22   :  { %v65_v8 = vmax.f32 %v63_v6, 0.0  ;;  %v66_v9 = vmax.f32 %v64_v7, 0.0 }
  0x23   :  { %p141_p0 = pnand %p140_p13, %p134_p10 }
  0x24   :  { %v68_v10 = vadd.f32 %v66_v9, %v65_v8 }
  0x26   :  { %70 = vst [vmem:[#allocation7] sm:$0xff] %v68_v10 }
  0x27   :  { %144 = shalt.err (!%p141_p0)
}
  0x28   :  { %80 = dma.vmem_to_hbm [thread:$0]  %s78_s21, 128, %s190_s2, [#allocation4]  }
  0x29   :  { %157 = dma.done.wait [#allocation4], 128  }
  0x2a   :  { %158 = vsyncadd [#allocation4], 4294967168 }
  0x2b   :  { %84 = vsyncpa [#allocation3], 1 }
  0x2c   :  { %85 = vsyncpa [#allocation6], 1 }
  0x2d   :  { %86 = vsyncpa [#allocation4], 1 }

</bundles_post_ra>
